<compile_context>
chip_gen: v5e
topology: v5e:2x2
jax: 0.10.0
libtpu: 0.0.40
codegen_flags: <defaults>
</compile_context>

<pallas_src>
import functools

import jax
import jax.numpy as jnp
from jax.experimental import pallas as pl
from jax.experimental.pallas import tpu as pltpu


# --------------------------------------------------------------------------- kernel


def _ffn_kernel(x_ref, w13_ref, w2t_ref, o_ref, acc_ref):
    # x_ref:   (tm, dim)       bf16 token tile (resident across the hidden axis)
    # w13_ref: (dim, 2*th)     fused [W1^T tile | W3^T tile] for hidden tile h
    # w2t_ref: (th, dim)       W2^T tile for hidden tile h
    # o_ref:   (tm, dim)       output tile (written once at the last hidden step)
    # acc_ref: (tm, dim) f32   VMEM accumulator scratch
    h = pl.program_id(1)

    @pl.when(h == 0)
    def _init():
        acc_ref[...] = jnp.zeros_like(acc_ref)

    th = w2t_ref.shape[0]

    # Single MXU matmul for both the gate (W1) and up (W3) projections.
    h13 = jnp.dot(x_ref[...], w13_ref[...], preferred_element_type=jnp.float32)
    h1 = h13[:, :th]
    h3 = h13[:, th:]

    # SiLU + gating in f32 (sigmoid -> EUP, multiplies -> VPU).
    gated = (h1 * jax.nn.sigmoid(h1)) * h3

    # Down projection: accumulate the partial sum over this hidden tile.
    acc_ref[...] += jnp.dot(gated.astype(w2t_ref.dtype), w2t_ref[...],
                            preferred_element_type=jnp.float32)

    @pl.when(h == pl.num_programs(1) - 1)
    def _finalize():
        o_ref[...] = acc_ref[...].astype(o_ref.dtype)


# --------------------------------------------------------------------------- wrapper


def _pick_tile(total, preferred, align):
    """Largest multiple of `align` that divides `total` and is <= preferred."""
    if total <= preferred:
        return total
    t = (preferred // align) * align
    while t >= align:
        if total % t == 0:
            return t
        t -= align
    return total


def prepare_ffn_weights(w1, w2, w3, *, th, compute_dtype=jnp.bfloat16):
    """One-time weight preparation (do this at init, NOT per forward call).

    w1, w3: (hidden, dim); w2: (dim, hidden)  -- PyTorch nn.Linear layout.
    Returns:
      w13: (dim, 2*hidden) bf16, tile-interleaved so block h of width 2*th holds
           [W1^T[:, h*th:(h+1)*th] | W3^T[:, h*th:(h+1)*th]]
      w2t: (hidden, dim) bf16
    """
    hidden, dim = w1.shape
    assert hidden % th == 0, "th must divide hidden"
    hn = hidden // th
    w1t = jnp.asarray(w1, compute_dtype).T.reshape(dim, hn, th)
    w3t = jnp.asarray(w3, compute_dtype).T.reshape(dim, hn, th)
    w13 = jnp.concatenate([w1t, w3t], axis=-1).reshape(dim, 2 * hidden)
    w2t = jnp.asarray(w2, compute_dtype).T  # (hidden, dim)
    return w13, w2t


@functools.partial(jax.jit, static_argnames=("th", "tm"))
def feed_forward(x, w13, w2t, *, th, tm=None):
    """x: (B, S, dim) float32/bf16. w13/w2t from prepare_ffn_weights(..., th=th)."""
    B, S, dim = x.shape
    hidden = w2t.shape[0]
    M = B * S

    if tm is None:
        tm = _pick_tile(M, 256, 16)
    assert M % tm == 0, "batch*seq must be divisible by tm"
    assert tm == M or tm % 16 == 0, "tm must be a multiple of 16 (bf16 sublane tile)"
    assert hidden % th == 0, "hidden must be divisible by th"
    assert th == hidden or th % 128 == 0, "th must be a multiple of 128"

    compute_dtype = w13.dtype
    x2d = x.reshape(M, dim).astype(compute_dtype)

    # VMEM budget: double-buffered input/output tiles + f32 accumulator + intermediates.
    bpe = jnp.dtype(compute_dtype).itemsize
    obpe = jnp.dtype(x.dtype).itemsize
    tile_bytes = (
        2 * (tm * dim + dim * 2 * th + th * dim) * bpe   # x / w13 / w2t tiles (x2 buffers)
        + 2 * tm * dim * obpe                            # output tile (x2 buffers)
        + tm * dim * 4                                   # f32 accumulator scratch
        + tm * 2 * th * 4 + tm * th * (4 + bpe)          # h13 / gated intermediates
    )
    vmem_limit = int(min(max(2 * tile_bytes, 32 * 1024 * 1024), 100 * 1024 * 1024))

    cost = pl.CostEstimate(
        flops=6 * M * dim * hidden,          # 3 matmuls x 2*M*dim*hidden
        transcendentals=M * hidden,          # sigmoid
        bytes_accessed=(x2d.size * bpe + w13.size * bpe + w2t.size * bpe
                        + M * dim * obpe),
    )

    out2d = pl.pallas_call(
        _ffn_kernel,
        out_shape=jax.ShapeDtypeStruct((M, dim), x.dtype),
        grid_spec=pltpu.PrefetchScalarGridSpec(
            num_scalar_prefetch=0,
            grid=(M // tm, hidden // th),
            in_specs=[
                pl.BlockSpec((tm, dim), lambda i, h: (i, 0)),        # x tile (resident over h)
                pl.BlockSpec((dim, 2 * th), lambda i, h: (0, h)),    # fused W1^T|W3^T tile
                pl.BlockSpec((th, dim), lambda i, h: (h, 0)),        # W2^T tile
            ],
            out_specs=pl.BlockSpec((tm, dim), lambda i, h: (i, 0)),
            scratch_shapes=[pltpu.VMEM((tm, dim), jnp.float32)],
        ),
        compiler_params=pltpu.CompilerParams(
            dimension_semantics=("parallel", "arbitrary"),
            vmem_limit_bytes=vmem_limit,
        ),
        cost_estimate=cost,
    )(x2d, w13, w2t)

    return out2d.reshape(B, S, dim)


# --------------------------------------------------------------------------- helpers


def _hidden_dim(dim, multiple_of, ffn_dim_multiplier=None):
    hidden = 4 * dim
    hidden = int(2 * hidden / 3)
    if ffn_dim_multiplier is not None:
        hidden = int(ffn_dim_multiplier * dim)
    hidden = multiple_of * ((hidden + multiple_of - 1) // multiple_of)
    return hidden


# --------------------------------------------------------------------------- test


if __name__ == "__main__":
    # Small shapes consistent with the module's __init__ logic.
    dim = 128
    multiple_of = 128
    ffn_dim_multiplier = None
    hidden = _hidden_dim(dim, multiple_of, ffn_dim_multiplier)  # -> 384

    batch, seq = 2, 16  # M = 32 -> two token tiles of 16; hidden=384 -> three th=128 tiles

    key = jax.random.PRNGKey(0)
    kx, k1, k2, k3 = jax.random.split(key, 4)

    x = jax.random.normal(kx, (batch, seq, dim), dtype=jnp.float32)
    # nn.Linear(in, out, bias=False).weight has shape (out, in)
    w1 = jax.random.normal(k1, (hidden, dim), dtype=jnp.float32) * (1.0 / dim ** 0.5)
    w2 = jax.random.normal(k2, (dim, hidden), dtype=jnp.float32) * (1.0 / hidden ** 0.5)
    w3 = jax.random.normal(k3, (hidden, dim), dtype=jnp.float32) * (1.0 / dim ** 0.5)

    th = 128  # exercise the hidden-axis accumulation path
    tm = 16   # exercise multiple token tiles

    # One-time weight prep (bf16, fused W1^T|W3^T), outside jit.
    w13, w2t = prepare_ffn_weights(w1, w2, w3, th=th)

    out = feed_forward(x, w13, w2t, th=th, tm=tm)
    jax.block_until_ready(out)

    # Reference 1: exact same bf16/f32 mixed-precision recipe (tight check).
    def ref_bf16(x, w1, w2, w3):
        xb = x.astype(jnp.bfloat16)
        h1 = jnp.dot(xb, w1.T.astype(jnp.bfloat16), preferred_element_type=jnp.float32)
        h3 = jnp.dot(xb, w3.T.astype(jnp.bfloat16), preferred_element_type=jnp.float32)
        g = (h1 * jax.nn.sigmoid(h1)) * h3
        return jnp.dot(g.astype(jnp.bfloat16), w2.T.astype(jnp.bfloat16),
                       preferred_element_type=jnp.float32).astype(x.dtype)

    # Reference 2: pure f32 spec semantics (loose check, bf16 rounding tolerance).
    def ref_f32(x, w1, w2, w3):
        h1 = x @ w1.T
        swish = h1 * jax.nn.sigmoid(h1)
        h3 = x @ w3.T
        return (swish * h3) @ w2.T

    exp_mixed = ref_bf16(x, w1, w2, w3)
    exp_f32 = ref_f32(x, w1, w2, w3)

    assert out.shape == (batch, seq, dim)
    err_tight = float(jnp.max(jnp.abs(out - exp_mixed)))
    assert jnp.allclose(out, exp_mixed, atol=1e-2, rtol=1e-2), \
        f"mixed-precision mismatch, max abs err {err_tight}"
    err_loose = float(jnp.max(jnp.abs(out - exp_f32)))
    assert jnp.allclose(out, exp_f32, atol=1e-1, rtol=1e-1), \
        f"f32 spec mismatch, max abs err {err_loose}"

    print("KERNEL_OK")
</pallas_src>

<mosaic_0001>
module attributes {stable_mosaic.version = 11 : i64} {
  func.func @_ffn_kernel(%arg0: i32, %arg1: i32, %arg2: memref<16x128xbf16, #tpu.memory_space<vmem>>, %arg3: memref<128x256xbf16, #tpu.memory_space<vmem>>, %arg4: memref<128x128xbf16, #tpu.memory_space<vmem>>, %arg5: memref<16x128xf32, #tpu.memory_space<vmem>>, %arg6: memref<16x128xf32, #tpu.memory_space<vmem>>) attributes {dimension_semantics = [#tpu.dimension_semantics<parallel>, #tpu.dimension_semantics<arbitrary>], iteration_bounds = array<i64: 2, 3>, scalar_prefetch = 0 : i64, scratch_operands = 1 : i64, tpu.core_type = #tpu.core_type<tc>, window_params = [{transform_indices = @transform_0, window_bounds = array<i64: 16, 128>}, {transform_indices = @transform_1, window_bounds = array<i64: 128, 256>}, {transform_indices = @transform_2, window_bounds = array<i64: 128, 128>}, {transform_indices = @transform_3, window_bounds = array<i64: 16, 128>}]} {
    %c0_i32 = arith.constant 0 : i32
    %0 = arith.cmpi eq, %arg1, %c0_i32 : i32
    %1 = arith.extui %0 : i1 to i32
    %c0_i32_0 = arith.constant 0 : i32
    %2 = arith.cmpi ne, %1, %c0_i32_0 : i32
    scf.if %2 {
      %cst_13 = arith.constant 0.000000e+00 : f32
      %24 = vector.broadcast %cst_13 : f32 to vector<16x128xf32>
      %c0_14 = arith.constant 0 : index
      %c0_15 = arith.constant 0 : index
      %25 = vector.load %arg6[%c0_14, %c0_15] : memref<16x128xf32, #tpu.memory_space<vmem>>, vector<16x128xf32>
      tpu.vector_store %arg6[%c0_14, %c0_15], %24 {strides = array<i32>} : memref<16x128xf32, #tpu.memory_space<vmem>>, vector<16x128xf32>,
    } else {
    }
    %c0 = arith.constant 0 : index
    %c0_1 = arith.constant 0 : index
    %3 = vector.load %arg2[%c0, %c0_1] : memref<16x128xbf16, #tpu.memory_space<vmem>>, vector<16x128xbf16>
    %c0_2 = arith.constant 0 : index
    %c0_3 = arith.constant 0 : index
    %4 = vector.load %arg3[%c0_2, %c0_3] : memref<128x256xbf16, #tpu.memory_space<vmem>>, vector<128x256xbf16>
    %cst = arith.constant dense<0.000000e+00> : vector<16x256xf32>
    %5 = tpu.matmul %3, %4, %cst {dimension_numbers = #tpu.dot_dimension_numbers<[1], [0], [0], [1], [0, 0, 1, 1], [], []>} : vector<16x128xbf16>, vector<128x256xbf16>, vector<16x256xf32> -> vector<16x256xf32>
    %6 = vector.extract_strided_slice %5 {offsets = [0, 0], sizes = [16, 128], strides = [1, 1]} : vector<16x256xf32> to vector<16x128xf32>
    %7 = vector.extract_strided_slice %5 {offsets = [0, 128], sizes = [16, 128], strides = [1, 1]} : vector<16x256xf32> to vector<16x128xf32>
    %8 = arith.negf %6 : vector<16x128xf32>
    %9 = math.exp %8 : vector<16x128xf32>
    %cst_4 = arith.constant 1.000000e+00 : f32
    %10 = vector.broadcast %cst_4 : f32 to vector<16x128xf32>
    %11 = arith.addf %10, %9 : vector<16x128xf32>
    %12 = arith.divf %10, %11 : vector<16x128xf32>
    %13 = arith.mulf %6, %12 : vector<16x128xf32>
    %14 = arith.mulf %13, %7 : vector<16x128xf32>
    %c0_5 = arith.constant 0 : index
    %c0_6 = arith.constant 0 : index
    %15 = vector.load %arg6[%c0_5, %c0_6] : memref<16x128xf32, #tpu.memory_space<vmem>>, vector<16x128xf32>
    %16 = arith.truncf %14 : vector<16x128xf32> to vector<16x128xbf16>
    %c0_7 = arith.constant 0 : index
    %c0_8 = arith.constant 0 : index
    %17 = vector.load %arg4[%c0_7, %c0_8] : memref<128x128xbf16, #tpu.memory_space<vmem>>, vector<128x128xbf16>
    %cst_9 = arith.constant dense<0.000000e+00> : vector<16x128xf32>
    %18 = tpu.matmul %16, %17, %cst_9 {dimension_numbers = #tpu.dot_dimension_numbers<[1], [0], [0], [1], [0, 0, 1, 1], [], []>} : vector<16x128xbf16>, vector<128x128xbf16>, vector<16x128xf32> -> vector<16x128xf32>
    %19 = arith.addf %15, %18 : vector<16x128xf32>
    %c0_10 = arith.constant 0 : index
    %c0_11 = arith.constant 0 : index
    %20 = vector.load %arg6[%c0_10, %c0_11] : memref<16x128xf32, #tpu.memory_space<vmem>>, vector<16x128xf32>
    tpu.vector_store %arg6[%c0_10, %c0_11], %19 {strides = array<i32>} : memref<16x128xf32, #tpu.memory_space<vmem>>, vector<16x128xf32>,
    %c2_i32 = arith.constant 2 : i32
    %21 = arith.cmpi eq, %arg1, %c2_i32 : i32
    %22 = arith.extui %21 : i1 to i32
    %c0_i32_12 = arith.constant 0 : i32
    %23 = arith.cmpi ne, %22, %c0_i32_12 : i32
    scf.if %23 {
      %c0_13 = arith.constant 0 : index
      %c0_14 = arith.constant 0 : index
      %24 = vector.load %arg6[%c0_13, %c0_14] : memref<16x128xf32, #tpu.memory_space<vmem>>, vector<16x128xf32>
      %c0_15 = arith.constant 0 : index
      %c0_16 = arith.constant 0 : index
      %25 = vector.load %arg5[%c0_15, %c0_16] : memref<16x128xf32, #tpu.memory_space<vmem>>, vector<16x128xf32>
      tpu.vector_store %arg5[%c0_15, %c0_16], %24 {strides = array<i32>} : memref<16x128xf32, #tpu.memory_space<vmem>>, vector<16x128xf32>,
    } else {
    }
    return
  }
  func.func @transform_0(%arg0: i32, %arg1: i32) -> (i32, i32) {
    %c0_i32 = arith.constant 0 : i32
    %c0_i32_0 = arith.constant 0 : i32
    return %arg0, %c0_i32 : i32, i32
  }
  func.func @transform_1(%arg0: i32, %arg1: i32) -> (i32, i32) {
    %c0_i32 = arith.constant 0 : i32
    %c0_i32_0 = arith.constant 0 : i32
    return %c0_i32, %arg1 : i32, i32
  }
  func.func @transform_2(%arg0: i32, %arg1: i32) -> (i32, i32) {
    %c0_i32 = arith.constant 0 : i32
    %c0_i32_0 = arith.constant 0 : i32
    return %arg1, %c0_i32 : i32, i32
  }
  func.func @transform_3(%arg0: i32, %arg1: i32) -> (i32, i32) {
    %c0_i32 = arith.constant 0 : i32
    %c0_i32_0 = arith.constant 0 : i32
    return %arg0, %c0_i32 : i32, i32
  }
}

</mosaic_0001>

<bundles_post_ra>
// kernel: feed_forward.1
= control target key start
LH: loop header
LB: loop body
LE: loop exit
PB: predicated region body
PF: predicated region fallthrough
CT: control target
= control target key end

     0   :  { %s1419_s0 = inlined_call_operand.vmem [shape: bf16[32,128], index: 0, kind: input, shape index: {}]   ;;  %s1420_s1 = inlined_call_operand.hbm [shape: bf16[128,768], index: 1, kind: input, shape index: {}]   ;;  %s1421_s2 = inlined_call_operand.hbm [shape: bf16[384,128], index: 2, kind: input, shape index: {}]   ;;  %s1422_s3 = inlined_call_operand.hbm [shape: f32[32,128], index: 3, kind: output, shape index: {}]  }
   0x1   :  { %1429 = sst [smem:[#allocation20_spill]] %s1420_s1 }
   0x2   :  { %8 = vsyncpa [#allocation4], 0 }
   0x3   :  { %10 = vsyncpa [#allocation4 + $0x1], 0 }
   0x4   :  { %11 = vsyncpa [#allocation7], 0 }
   0x5   :  { %13 = vsyncpa [#allocation7 + $0x1], 0 }
   0x6   :  { %14 = vsyncpa [#allocation5], 0 }
   0x7   :  { %16 = vsyncpa [#allocation5 + $0x1], 0  ;;  %s1170_s12 = smov 0   ;;  %s1172_s13 = smov 0  }
   0x8   :  { %s1174_s14 = smov 0   ;;  %s1176_s15 = smov 0  }
   0x9   :  { %s1178_s16 = smov 0   ;;  %s1180_s17 = smov 0  }
   0xa   :  { %s1182_s18 = smov 0   ;;  %s1184_s19 = smov 0  }
   0xb   :  { %s1186_s20 = smov 0   ;;  %s1188_s21 = smov 0  }
   0xc   :  { %s1190_s22 = smov 0  }
   0xd LB: > { %1430 = sst [smem:[#allocation12_spill]] %s1108_s14  ;;  %s678_s23 = sadd.s32 4294967295, %s1140_s22   ;;  %s1140_s22 = sphi %s1190_s22, %s22_s22   ;;  %s1136_s21 = sphi %s1188_s21, %s1451_s21   ;;  %s1132_s20 = sphi %s1186_s20, %s1457_s20   ;;  %s1128_s19 = sphi %s1184_s19, %s1449_s19   ;;  %s1124_s18 = sphi %s1182_s18, %s1456_s18   ;;  %s1120_s17 = sphi %s1180_s17, %s1448_s17   ;;  %s1116_s16 = sphi %s1178_s16, %s1455_s16   ;;  %s1112_s15 = sphi %s1176_s15, %s1454_s15   ;;  %s1108_s14 = sphi %s1174_s14, %s1446_s14   ;;  %s1104_s13 = sphi %s1172_s13, %s1453_s13   ;;  %s1100_s12 = sphi %s1170_s12, %s1452_s12  }
   0xe   : > { %1431 = sst [smem:[#allocation13_spill]] %s1120_s17  ;;  %s679_s24 = sadd.s32 4294967294, %s1140_s22  }
   0xf   : > { %1432 = sst [smem:[#allocation14_spill]] %s1136_s21  ;;  %s31_s25 = sadd.s32 1, %s1132_s20 }
  0x10   : > { %s34_s26 = sadd.s32 1, %s1136_s21  ;;  %p32_p0 = scmp.ge.s32.totalorder %s31_s25, 3 }
  0x11   : > { %s67_s27 = sadd.s32 1, %s1120_s17  ;;  %p74_p1 = scmp.ne.s32.totalorder %s1120_s17, %s1116_s16 }
  0x12   : > { %p75_p2 = scmp.eq.s32.totalorder %s1140_s22, 0  ;;  %s1459_s25 = smov (%p32_p0, %s31_s25), 0 }
  0x13   : > { %1433 = sst [smem:[#allocation15_spill]] %s1459_s25  ;;  %s1461_s26 = smov (!%p32_p0, %s34_s26), %s1136_s21 }
  0x14   : > { %s64_s28 = ssub.s32 %s1132_s20, %s1459_s25  ;;  %p1236_p3 = por %p75_p2, %p74_p1 }
  0x15   : > { %p36_p4 = scmp.ge.s32.totalorder %s1461_s26, 2  ;;  %p65_p5 = scmp.eq.s32.totalorder %s64_s28, 0 }
  0x16   : > { %p80_p6 = scmp.ne.s32.totalorder %s1116_s16, %s1112_s15  ;;  %p81_p7 = scmp.eq.s32.totalorder %s678_s23, 0 }
  0x17   : > { %s1463_s26 = smov (%p36_p4, %s1461_s26), 0  ;;  %s119_s6 = sadd.s32 1, %s1108_s14 }
  0x18   : > { %1435 = sst [smem:[#allocation16_spill]] %s1463_s26  ;;  %p1246_p8 = por %p81_p7, %p80_p6 }
  0x19   : > { %s1244_s30 = scalar_select %p65_p5, %s1120_s17, %s67_s27  }
  0x1a   : > { %s116_s5 = ssub.s32 %s1136_s21, %s1463_s26  ;;  %p129_p10 = scmp.ne.s32.totalorder %s1108_s14, %s1104_s13 }
  0x1b   : > { %1436 = sst [smem:[#allocation17_spill]] %s1244_s30  ;;  %p117_p9 = scmp.eq.s32.totalorder %s116_s5, 0 }
  0x1c   : > { %p130_p11 = scmp.eq.s32.totalorder %s678_s23, 5  ;;  %p135_p13 = scmp.ne.s32.totalorder %s1104_s13, %s1100_s12 }
  0x1d   : > { %s1256_s7 = scalar_select %p117_p9, %s1108_s14, %s119_s6  }
  0x1e   : > { %p1258_p12 = por %p130_p11, %p129_p10  ;;  %p136_p0 = scmp.eq.s32.totalorder %s679_s24, 5 }
  0x1f   : > { %1438 = sst [smem:[#allocation18_spill]] %s1256_s7  ;;  %p848_p1 = scmp.lt.s32.totalorder %s1140_s22, 6 }
  0x20   : > { %s1266_s9 = sand.u32 1, %s1120_s17   ;;  %p1268_p2 = por %p136_p0, %p135_p13 }
  0x21   : > { %s682_s11 = sshll.u32 %s1266_s9, 7  ;;  %s803_s15 = sshll.u32 %s1132_s20, 3 }
  0x22   : > { %s1440_s10 = scalar_select %p1268_p2, 1, 0 }
  0x23   : > { %s1442_s1 = sld [smem:[#allocation20_spill]]  ;;  %s169_s24 = scalar_lea.vmem [#allocation3], %s682_s11 }
  0x24   : > { %1441 = sst [smem:[#allocation19_spill]] %s1440_s10  ;;  %s177_s6 = sshll.u32 %s169_s24, 4  ;;  %s178_s6 = int_to_ptr.vmem [resolvable:$true] %s177_s6 }
  0x25   : > { %p1279_p4 = pnand %p848_p1, %p1236_p3  ;;  %p688_p5 = scmp.ge.s32.totalorder %s1140_s22, 1 }
  0x26   : > { %s166_s25 = scalar_lea.sflag [#allocation4], %s1266_s9  ;;  %s1142_s21 = smov 384  }
  0x27   : > { %s1143_s30 = smov 128   ;;  %s1144_s23 = smov 8  }
  0x28   : > { %p207_p6 = scmp.lt.s32.totalorder %s1140_s22, 7  ;;  %s685_s11 = sshll.u32 %s1266_s9, 6 }
  0x29   : > { %s174_s28 = scalar_lea.hbm %s1442_s1, %s803_s15  ;;  %s804_s15 = sshll.u32 %s1132_s20, 6 }
  0x2a   : > { %s175_s5 = sshll.u32 %s174_s28, 4  ;;  %p208_p7 = pnand %p688_p5, %p207_p6  ;;  %s176_s5 = int_to_ptr.hbm [resolvable:$true] %s175_s5 }
  0x2b   : > { %840 = dma.hbm_to_vmem [thread:$0]  (!%p1279_p4), %s176_s5, 2048, %s178_s6, %s166_s25, %s1142_s21, %s1143_s30, %s1144_s23  }
  0x2c   : > { %s196_s28 = scalar_lea.hbm %s1421_s2, %s804_s15  ;;  %s191_s24 = scalar_lea.vmem [#allocation6], %s685_s11 }
  0x2d   : > { %s199_s1 = sshll.u32 %s191_s24, 4  ;;  %s197_s17 = sshll.u32 %s196_s28, 4  ;;  %s200_s1 = int_to_ptr.vmem [resolvable:$true] %s199_s1  ;;  %s198_s17 = int_to_ptr.hbm [resolvable:$true] %s197_s17 }
  0x2e   : > { %s188_s7 = scalar_lea.sflag [#allocation7], %s1266_s9  ;;  %s1145_s14 = smov 64  }
  0x2f   : > { %s1146_s10 = smov 4   ;;  %211 = sbr.rel (%p208_p7) target bundleno = 437 (0x1b5), region = 32 }
  0x30   : > { %843 = dma.hbm_to_vmem [thread:$0]  (!%p1279_p4), %s198_s17, 1024, %s200_s1, %s188_s7, %s1145_s14, %s1145_s14, %s1146_s10  }
  0x31   : > { %s213_s21 = sand.u32 (!%p208_p7), 1, %s1116_s16  }
  0x32   : > { %s689_s25 = sshll.u32 (!%p208_p7), %s213_s21, 7  ;;  %s214_s30 = scalar_lea.sflag (!%p208_p7), [#allocation4], %s213_s21 }
  0x33   : > { %s1297_s5 = scalar_lea.vmem (!%p208_p7), [#allocation3], %s689_s25 }
  0x34   : > { %1087 = dma.done.wait (%p1246_p8), %s214_s30, 2048  }
  0x35   : > { %1089 = vsyncadd (%p1246_p8), %s214_s30, 4294965248  ;;  %s690_s6 = sshll.u32 %s213_s21, 6  ;;  %s224_s9 = scalar_lea.sflag [#allocation7], %s213_s21 }
  0x36   : > { %s1303_s23 = scalar_lea.vmem [#allocation6], %s690_s6 }
  0x37   : > { %1091 = dma.done.wait (%p1246_p8), %s224_s9, 1024  }
  0x38   : > { %1093 = vsyncadd (%p1246_p8), %s224_s9, 4294966272  ;;  %s258_s1 = sand.u32 1, %s1104_s13   ;;  %s692_s14 = sshll.u32 %s1128_s19, 1 }
  0x39   : > { %s691_s17 = sshll.u32 %s258_s1, 4  ;;  %p262_p3 = scmp.lt.s32.totalorder %s692_s14, 3 }
  0x3a   : > { %s1318_s15 = scalar_lea.vmem [#allocation8], %s691_s17  ;;  %p694_p9 = scmp.ne.s32.totalorder %s1124_s18, 0 }
  0x3b   : > { %s1465_s14 = smov (!%p262_p3, %s692_s14), 3 }
  0x3c   : > { %s693_s26 = sshll.u32 %s1465_s14, 2  ;;  %273 = sbr.rel (%p694_p9) target bundleno = 68 (0x44), region = 44 }
  0x3d   : > { %s1316_s11 = scalar_lea.vmem %s1419_s0, %s693_s26 }
  0x41   : > { %v1147_v0 = vmov 0.0  }
  0x42   : > { %274 = vst [vmem:[#allocation2] sm:$0xff] %v1147_v0 }
  0x43   : > { %275 = vst [vmem:[#allocation2 + $0x8] sm:$0xff] %v1147_v0 }
  0x44 PF: > { %v757_v1 = vld [vmem:[%s1297_s5 + $0x70] sm:$0xf]  ;;  %v821_v2 = vld [vmem:[%s1297_s5 + $0x74] sm:$0xf0]  ;;  %v749_v3 = vld [vmem:[%s1297_s5 + $0x60] sm:$0xf] }
  0x45   : > { %v758_v4 = vor.u32 %v821_v2, %v757_v1  ;;  %v819_v5 = vld [vmem:[%s1297_s5 + $0x64] sm:$0xf0]  ;;  %v741_v7 = vld [vmem:[%s1297_s5 + $0x50] sm:$0xf]  ;;  %v817_v8 = vld [vmem:[%s1297_s5 + $0x54] sm:$0xf0] }
  0x46   : > { %v750_v6 = vor.u32 %v819_v5, %v749_v3  ;;  %v820_v9 = vld [vmem:[%s1297_s5 + $0x74] sm:$0xf]  ;;  %v759_v10 = vld [vmem:[%s1297_s5 + $0x78] sm:$0xf0]  ;;  %v818_v12 = vld [vmem:[%s1297_s5 + $0x64] sm:$0xf]  ;;  %v742_v14 = vor.u32 %v817_v8, %v741_v7 }
  0x47   : > { %380 = vmatpush.bf16.msra.mxu0 %v758_v4  ;;  %v762_v11 = vor.u32 %v820_v9, %v759_v10  ;;  %v751_v13 = vld [vmem:[%s1297_s5 + $0x68] sm:$0xf0]  ;;  %v733_v15 = vld [vmem:[%s1297_s5 + $0x40] sm:$0xf]  ;;  %v815_v17 = vld [vmem:[%s1297_s5 + $0x44] sm:$0xf0] }
  0x48   : > { %v754_v16 = vor.u32 %v818_v12, %v751_v13  ;;  %v816_v18 = vld [vmem:[%s1297_s5 + $0x54] sm:$0xf]  ;;  %v743_v19 = vld [vmem:[%s1297_s5 + $0x58] sm:$0xf0]  ;;  %v734_v20 = vor.u32 %v815_v17, %v733_v15  ;;  %v725_v21 = vld [vmem:[%s1297_s5 + $0x30] sm:$0xf] }
  0x49   : > { %394 = vmatpush.bf16.msra.mxu1 %v762_v11  ;;  %v746_v22 = vor.u32 %v816_v18, %v743_v19  ;;  %v813_v23 = vld [vmem:[%s1297_s5 + $0x34] sm:$0xf0]  ;;  %v814_v24 = vld [vmem:[%s1297_s5 + $0x44] sm:$0xf]  ;;  %v735_v25 = vld [vmem:[%s1297_s5 + $0x48] sm:$0xf0] }
  0x4a   : > { %v726_v26 = vor.u32 %v813_v23, %v725_v21  ;;  %v717_v27 = vld [vmem:[%s1297_s5 + $0x20] sm:$0xf]  ;;  %v738_v28 = vor.u32 %v814_v24, %v735_v25  ;;  %v811_v29 = vld [vmem:[%s1297_s5 + $0x24] sm:$0xf0]  ;;  %v812_v30 = vld [vmem:[%s1297_s5 + $0x34] sm:$0xf] }
  0x4b   : > { %381 = vmatpush.bf16.msra.mxu0 %v750_v6  ;;  %v727_v31 = vld [vmem:[%s1297_s5 + $0x38] sm:$0xf0]  ;;  %v718_v32 = vor.u32 %v811_v29, %v717_v27  ;;  %v709_v33 = vld [vmem:[%s1297_s5 + $0x10] sm:$0xf]  ;;  %v809_v35 = vld [vmem:[%s1297_s5 + $0x14] sm:$0xf0] }
  0x4c   : > { %v730_v34 = vor.u32 %v812_v30, %v727_v31  ;;  %v810_v36 = vld [vmem:[%s1297_s5 + $0x24] sm:$0xf]  ;;  %v719_v37 = vld [vmem:[%s1297_s5 + $0x28] sm:$0xf0]  ;;  %v710_v38 = vor.u32 %v809_v35, %v709_v33  ;;  %v701_v39 = vld [vmem:[%s1297_s5] sm:$0xf] }
  0x4d   : > { %395 = vmatpush.bf16.msra.mxu1 %v754_v16  ;;  %v722_v40 = vor.u32 %v810_v36, %v719_v37  ;;  %v807_v41 = vld [vmem:[%s1297_s5 + $0x4] sm:$0xf0]  ;;  %v808_v42 = vld [vmem:[%s1297_s5 + $0x14] sm:$0xf]  ;;  %v711_v43 = vld [vmem:[%s1297_s5 + $0x18] sm:$0xf0] }
  0x4e   : > { %v702_v44 = vor.u32 %v807_v41, %v701_v39  ;;  %v714_v45 = vor.u32 %v808_v42, %v711_v43  ;;  %v806_v46 = vld [vmem:[%s1297_s5 + $0x4] sm:$0xf]  ;;  %v703_v47 = vld [vmem:[%s1297_s5 + $0x8] sm:$0xf0]  ;;  %v805_v48 = vld [vmem:[%s1316_s11] sm:$0xff]  ;;  %p797_p8 = scmp.ne.s32.totalorder %s1124_s18, 2 }
  0x4f   : > { %382 = vmatpush.bf16.msra.mxu0 %v742_v14  ;;  %v706_v49 = vor.u32 %v806_v46, %v703_v47  ;;  %v829_v50 = vld [vmem:[%s1303_s23 + $0x38] sm:$0xff]  ;;  %v828_v51 = vld [vmem:[%s1303_s23 + $0x30] sm:$0xff]  ;;  %v827_v52 = vld [vmem:[%s1303_s23 + $0x28] sm:$0xff] }
  0x50   : > { %517 = vmatpush.bf16.msra.mxu2 %v829_v50  ;;  %v826_v53 = vld [vmem:[%s1303_s23 + $0x20] sm:$0xff]  ;;  %v825_v54 = vld [vmem:[%s1303_s23 + $0x18] sm:$0xff]  ;;  %v824_v55 = vld [vmem:[%s1303_s23 + $0x10] sm:$0xff] }
  0x51   : > { %396 = vmatpush.bf16.msra.mxu1 %v746_v22  ;;  %v823_v58 = vld [vmem:[%s1303_s23 + $0x8] sm:$0xff]  ;;  %v822_v59 = vld [vmem:[%s1303_s23] sm:$0xff]  ;;  %v450_v29 = vld [vmem:[#allocation2] sm:$0xff] }
  0x53   : > { %383 = vmatpush.bf16.msra.mxu0 %v734_v20 }
  0x54   : > { %518 = vmatpush.bf16.msra.mxu2 %v828_v51 }
  0x55   : > { %397 = vmatpush.bf16.msra.mxu1 %v738_v28 }
  0x57   : > { %384 = vmatpush.bf16.msra.mxu0 %v726_v26 }
  0x58   : > { %519 = vmatpush.bf16.msra.mxu2 %v827_v52 }
  0x59   : > { %398 = vmatpush.bf16.msra.mxu1 %v730_v34 }
  0x5b   : > { %385 = vmatpush.bf16.msra.mxu0 %v718_v32  ;;  %v451_v32 = vld [vmem:[#allocation2 + $0x8] sm:$0xff] }
  0x5c   : > { %520 = vmatpush.bf16.msra.mxu2 %v826_v53 }
  0x5d   : > { %399 = vmatpush.bf16.msra.mxu1 %v722_v40 }
  0x5f   : > { %386 = vmatpush.bf16.msra.mxu0 %v710_v38 }
  0x60   : > { %521 = vmatpush.bf16.msra.mxu2 %v825_v54 }
  0x61   : > { %400 = vmatpush.bf16.msra.mxu1 %v714_v45 }
  0x63   : > { %387 = vmatpush.bf16.msra.mxu0 %v702_v44 }
  0x64   : > { %522 = vmatpush.bf16.msra.mxu2 %v824_v55 }
  0x65   : > { %401 = vmatpush.bf16.msra.mxu1 %v706_v49 }
  0x66   : > { %388 = vmatmul.bf16.vlgmr.msra.gmra.mxu0 %v805_v48 }
  0x68   : > { %402 = vmatmul.bf16.vlgmr.msra.gmra.mxu1 %v805_v48  ;;  %523 = vmatpush.bf16.msra.mxu2 %v823_v58 }
  0x6c   : > { %524 = vmatpush.bf16.msra.mxu2 %v822_v59 }
  0xe3   : > { %v389_v56 = vpop.f32.mrf.mxu0 }
  0xe4   : > { %v763_v57 = vmul.f32 -1.442695, %v389_v56 }
  0xe5   : > { %v403_v11 = vpop.f32.mrf.mxu1 }
  0xe6   : > { %946 = vpow2.f32 %v763_v57 }
  0xeb   : > { %v391_v60 = vpop.f32.mrf.mxu0 }
  0xec   : > { %v947_v61 = vpop.eup %946  ;;  %v764_v62 = vmul.f32 -1.442695, %v391_v60 }
  0xed   : > { %v414_v63 = vadd.f32 1.0, %v947_v61  ;;  %v405_v25 = vpop.f32.mrf.mxu1 }
  0xee   : > { %948 = vpow2.f32 %v764_v62 }
  0xef   : > { %950 = vrcp.f32 %v414_v63  ;;  %v427_v8 = vand.u32 2147483648, %v414_v63  ;;  %vm421_vm1 = vweird.f32 %v414_v63  ;;  %v425_v9 = vand.u32 2147483647, %v414_v63 }
  0xf1   : > { %v428_v14 = vor.u32 1.1754944e-38, %v427_v8  ;;  %vm426_vm3 = vcmp.eq.f32.partialorder %v425_v9, 8.507059e+37 }
  0xf4   : > { %v949_v0 = vpop.eup %948 }
  0xf5   : > { %v951_v1 = vpop.eup %950  ;;  %v415_v2 = vadd.f32 1.0, %v949_v0 }
  0xf6   : > { %v417_v3 = vmul.f32 %v951_v1, %v414_v63  ;;  %vm422_vm0 = vweird.f32 %v951_v1 }
  0xf7   : > { %952 = vrcp.f32 %v415_v2  ;;  %vm423_vm2 = vmor %vm421_vm1, %vm422_vm0  ;;  %v442_v15 = vand.u32 2147483648, %v415_v2  ;;  %v440_v17 = vand.u32 2147483647, %v415_v2  ;;  %vm436_vm5 = vweird.f32 %v415_v2 }
  0xf8   : > { %v418_v4 = vsub.f32 1.0, %v417_v3 }
  0xf9   : > { %v443_v20 = vor.u32 1.1754944e-38, %v442_v15  ;;  %vm441_vm7 = vcmp.eq.f32.partialorder %v440_v17, 8.507059e+37 }
  0xfa   : > { %v419_v5 = vmul.f32 %v951_v1, %v418_v4 }
  0xfc   : > { %v420_v6 = vadd.f32 %v951_v1, %v419_v5 }
  0xfd   : > { %v953_v7 = vpop.eup %952 }
  0xfe   : > { %v432_v10 = vmul.f32 %v953_v7, %v415_v2  ;;  %v424_v12 = vsel %vm423_vm2, %v951_v1, %v420_v6  ;;  %vm437_vm4 = vweird.f32 %v953_v7 }
  0xff   : > { %v429_v18 = vsel %vm426_vm3, %v428_v14, %v424_v12  ;;  %vm438_vm6 = vmor %vm436_vm5, %vm437_vm4 }
 0x100   : > { %v433_v13 = vsub.f32 1.0, %v432_v10  ;;  %v446_v21 = vmul.f32 %v429_v18, %v389_v56 }
 0x102   : > { %v434_v16 = vmul.f32 %v953_v7, %v433_v13  ;;  %v448_v26 = vmul.f32 %v446_v21, %v403_v11 }
 0x104   : > { %v435_v19 = vadd.f32 %v953_v7, %v434_v16 }
 0x106   : > { %v439_v22 = vsel %vm438_vm6, %v953_v7, %v435_v19 }
 0x107   : > { %v444_v23 = vsel %vm441_vm7, %v443_v20, %v439_v22 }
 0x108   : > { %v447_v24 = vmul.f32 %v444_v23, %v391_v60 }
 0x10a   : > { %v449_v27 = vmul.f32 %v447_v24, %v405_v25 }
 0x10c   : > { %v452_v28 = vpack.c.bf16 %v449_v27, %v448_v26 }
 0x10e   : > { %525 = vmatmul.bf16.vlgmr.msra.gmra.mxu2 %v452_v28 }
 0x191   : > { %v526_v30 = vpop.f32.mrf.mxu2 }
 0x192   : > { %v531_v31 = vadd.f32 %v526_v30, %v450_v29 }
 0x194   : > { %533 = vst [vmem:[#allocation2] sm:$0xff] %v531_v31 }
 0x198   : > { %538 = sbr.rel (%p797_p8) target bundleno = 421 (0x1a5), region = 48 }
 0x199   : > { %v528_v33 = vpop.f32.mrf.mxu2 }
 0x19a   : > { %v532_v34 = vadd.f32 %v528_v33, %v451_v32 }
 0x19c   : > { %534 = vst [vmem:[#allocation2 + $0x8] sm:$0xff] %v532_v34 }
 0x19d   : > { %v539_v35 = vld [vmem:[#allocation2] sm:$0xff] }
 0x19e   : > { %541 = vst [vmem:[%s1318_s15] sm:$0xff] %v539_v35 }
 0x1a3   : > { %v540_v36 = vld [vmem:[#allocation2 + $0x8] sm:$0xff] }
 0x1a4   : > { %542 = vst [vmem:[%s1318_s15 + $0x8] sm:$0xff] %v540_v36 }
 0x1a5 PF: > { %s830_s4 = sshll.u32 %s1128_s19, 4  ;;  %s556_s24 = sshll.u32 %s1318_s15, 4  ;;  %s557_s24 = int_to_ptr.vmem [resolvable:$true] %s556_s24 }
 0x1a6   : > { %s555_s28 = scalar_lea.hbm %s1422_s3, %s830_s4  ;;  %s544_s21 = scalar_lea.sflag [#allocation5], %s258_s1 }
 0x1a7   : > { %s558_s18 = sshll.u32 %s555_s28, 4  ;;  %s1034_s19 = scalar_lea.hbm %s1422_s3, 32  ;;  %s559_s18 = int_to_ptr.hbm [resolvable:$true] %s558_s18 }
 0x1a8   : > { %s1028_s25 = sshra.s32 %s559_s18, 4  ;;  %s1029_s25 = int_to_ptr.hbm [resolvable:$true] %s1028_s25 }
 0x1a9   : > { %s1030_s30 = scalar_lea.hbm %s1029_s25, 16  ;;  %p1035_p0 = scmp.lt.s32.totalorder %s1029_s25, %s1422_s3 }
 0x1aa   : > { %p1031_p10 = scmp.ne.s32.totalorder %s1029_s25, %s1030_s30  ;;  %p1036_p1 = scmp.lt.s32.totalorder %s1034_s19, %s1030_s30 }
 0x1ac   : > { %p1032_p11 = pnand %p1031_p10, %p1258_p12  ;;  %p1037_p4 = por %p1036_p1, %p1035_p0 }
 0x1ae   : > { %p1033_p13 = pneg %p1032_p11 }
 0x1b0   : > { %p1038_p5 = pnand %p1037_p4, %p1033_p13 }
 0x1b2   : > { %1041 = shalt.err (!%p1038_p5)
}
 0x1b3   : > { %s1148_s1 = smov 128   ;;  %s1149_s14 = smov 8  }
 0x1b4   : > { %835 = dma.vmem_to_hbm [thread:$0]  (%p1258_p12), %s557_s24, 256, %s559_s18, %s544_s21, %s1148_s1, %s1148_s1, %s1149_s14  }
 0x1b5 PF: > { %p849_p6 = scmp.ge.s32.totalorder %s1140_s22, 2  ;;  %s573_s26 = sand.u32 1, %s1100_s12  }
 0x1b6   : > { %s574_s7 = scalar_lea.sflag [#allocation5], %s573_s26 }
 0x1b7   : > { %p845_p7 = pnand %p849_p6, %p1268_p2 }
 0x1b9   : > { %p846_p3 = pneg %p845_p7 }
 0x1bb   : > { %1095 = dma.done.wait (%p846_p3), %s574_s7, 256  }
 0x1bc   : > { %1097 = vsyncadd (%p846_p3), %s574_s7, 4294967040  ;;  %s22_s22 = sadd.s32 1, %s1140_s22   ;;  %s1445_s10 = sld [smem:[#allocation12_spill]] }
 0x1bd   : > { %p19_p9 = scmp.ge.s32.totalorder %s22_s22, 8   ;;  %s1446_s14 = sld [smem:[#allocation18_spill]] }
 0x1be   : > { %s1447_s8 = sld [smem:[#allocation13_spill]]  ;;  %s1452_s12 = smov %s1104_s13 }
 0x1bf   : > { %s1448_s17 = sld [smem:[#allocation17_spill]]  ;;  %s1454_s15 = smov %s1116_s16 }
 0x1c0   : > { %s1449_s19 = sld [smem:[#allocation14_spill]]  ;;  %s1456_s18 = smov %s1132_s20 }
 0x1c1   : > { %s1450_s11 = sld [smem:[#allocation15_spill]] }
 0x1c2   : > { %s1451_s21 = sld [smem:[#allocation16_spill]]  ;;  %s1453_s13 = smov %s1445_s10 }
 0x1c3   :  { %21 = sbr.rel (!%p19_p9) target bundleno = 13 (0xd), region = 101 }
 0x1c4   : > { %s1455_s16 = smov %s1447_s8 }
 0x1c7   : > { %s1457_s20 = smov %s1450_s11 }
 0x1c8   :  { %580 = vsyncpa [#allocation4], 1 }
 0x1c9   :  { %582 = vsyncpa [#allocation4 + $0x1], 1 }
 0x1ca   :  { %583 = vsyncpa [#allocation7], 1 }
 0x1cb   :  { %585 = vsyncpa [#allocation7 + $0x1], 1 }
 0x1cc   :  { %586 = vsyncpa [#allocation5], 1 }
 0x1cd   :  { %588 = vsyncpa [#allocation5 + $0x1], 1 }

</bundles_post_ra>
